<compile_context>
chip_gen: v7x
topology: tpu7x:2x2x1
jax: 0.10.0
libtpu: 0.0.40
codegen_flags: <defaults>
</compile_context>

<pallas_src>
import jax
import jax.numpy as jnp
from jax.experimental import pallas as pl
from jax.experimental.pallas import tpu as pltpu

LANES = 128
TM_MAX = 2048      # rows per block -> 2048*128*4 B = 1 MiB per f32 input block
NCORES = 2         # leading "parallel" grid axis: uses both v7x TensorCores


def _cdiv(a, b):
    return -(-a // b)


def _round_up(a, b):
    return _cdiv(a, b) * b


def _sublane_multiple(dtype):
    # (8,128) tiles for 4-byte dtypes, (16,128) for bf16, (32,128) for int8/fp8.
    return max(8, 32 // jnp.dtype(dtype).itemsize)


def bce_dice_loss(y_pr, y_gt, lambda_dice=1.0, lambda_bce=1.0, smooth=1.0):
    """JAX/Pallas equivalent of BCEDiceLoss.forward(y_pr, y_gt)."""
    n_valid = int(y_pr.size)
    x_flat = jnp.ravel(y_pr)          # stream native dtype; cast in-kernel
    t_flat = jnp.ravel(y_gt)

    rem = (-n_valid) % LANES
    if rem:
        # TODO(synk): lane-alignment pad copies the stream once; only hit when
        # numel is not a multiple of 128 (rare for NCHW tensors).
        x_flat = jnp.pad(x_flat, (0, rem))
        t_flat = jnp.pad(t_flat, (0, rem))
    rows = (n_valid + rem) // LANES

    sub = max(_sublane_multiple(x_flat.dtype), _sublane_multiple(t_flat.dtype))
    tm = min(TM_MAX, _round_up(rows, sub))       # big lane-dense blocks
    x2d = x_flat.reshape(rows, LANES)
    t2d = t_flat.reshape(rows, LANES)

    nblocks = _cdiv(rows, tm)        # row-blocks over the whole stream
    spc = _cdiv(nblocks, NCORES)     # steps per core (reduction axis, last)
    blk_elems = tm * LANES

    def in_map(c, s):
        # Clamp so the DMA never walks past the array; clamped (duplicate)
        # steps are fully neutralized by the in-kernel index mask.
        return (jnp.minimum(c * spc + s, nblocks - 1), 0)

    def kernel(x_ref, t_ref, out_ref):
        s = pl.program_id(1)

        @pl.when(s == 0)
        def _init():
            out_ref[...] = jnp.zeros_like(out_ref)

        x = x_ref[...].astype(jnp.float32)
        t = t_ref[...].astype(jnp.float32)

        # Validity mask built in-kernel (no mask array streamed from HBM).
        # NOTE: int32 global indices -> fine up to ~2.1e9 elements.
        start = (pl.program_id(0) * spc + s) * blk_elems
        ridx = jax.lax.broadcasted_iota(jnp.int32, (tm, LANES), 0)
        lidx = jax.lax.broadcasted_iota(jnp.int32, (tm, LANES), 1)
        mask = (start + ridx * LANES + lidx) < n_valid

        # Share exp(-|x|) between sigmoid and the stable BCE-with-logits term.
        e = jnp.exp(-jnp.abs(x))
        p = jnp.where(x >= 0, 1.0, e) / (1.0 + e)              # sigmoid(x)
        bce = jnp.maximum(x, 0.0) - x * t + jnp.log1p(e)       # stable BCE

        p_m = jnp.where(mask, p, 0.0)
        t_m = jnp.where(mask, t, 0.0)
        bce_m = jnp.where(mask, bce, 0.0)

        def fold(v):
            # (tm, 128) -> (8, 128): VALU-only vreg adds, no cross-lane work.
            return jnp.sum(v.reshape(tm // 8, 8, LANES), axis=0)

        out_ref[0:8, :] += fold(p_m * t_m)     # intersection
        out_ref[8:16, :] += fold(p_m)          # sum(sigmoid(x))
        out_ref[16:24, :] += fold(t_m)         # sum(targets)
        out_ref[24:32, :] += fold(bce_m)       # sum(bce elementwise)

    partials = pl.pallas_call(
        kernel,
        out_shape=jax.ShapeDtypeStruct((NCORES * 32, LANES), jnp.float32),
        grid_spec=pltpu.PrefetchScalarGridSpec(
            num_scalar_prefetch=0,
            grid=(NCORES, spc),
            in_specs=[
                pl.BlockSpec((tm, LANES), in_map),
                pl.BlockSpec((tm, LANES), in_map),
            ],
            out_specs=pl.BlockSpec((32, LANES), lambda c, s: (c, 0)),
        ),
        compiler_params=pltpu.CompilerParams(
            dimension_semantics=("parallel", "arbitrary"),
            vmem_limit_bytes=32 * 1024 * 1024,
        ),
    )(x2d, t2d)

    # Tiny epilogue in plain JAX: one cross-lane reduce of 2*32*128 floats.
    sums = partials.reshape(NCORES, 4, 8, LANES).sum(axis=(0, 2, 3))
    intersection, sum_p, sum_t, sum_bce = sums[0], sums[1], sums[2], sums[3]

    dice = (2.0 * intersection + smooth) / (sum_p + sum_t + smooth)
    dice_loss = 1.0 - dice
    bce = sum_bce / n_valid
    return lambda_dice * dice_loss + lambda_bce * bce


def _reference(y_pr, y_gt, lambda_dice=1.0, lambda_bce=1.0, smooth=1.0):
    x = y_pr.astype(jnp.float32)
    t = y_gt.astype(jnp.float32)
    p = jax.nn.sigmoid(x)
    inter = jnp.sum(p * t)
    dice = (2.0 * inter + smooth) / (jnp.sum(p) + jnp.sum(t) + smooth)
    bce = jnp.mean(jnp.maximum(x, 0.0) - x * t + jnp.log1p(jnp.exp(-jnp.abs(x))))
    return lambda_dice * (1.0 - dice) + lambda_bce * bce


if __name__ == "__main__":
    key = jax.random.PRNGKey(0)
    k1, k2 = jax.random.split(key)
    # NCHW: batch=2, channels=4, spatial=16x16
    y_pr = jax.random.normal(k1, (2, 4, 16, 16), dtype=jnp.float32) * 2.0
    y_gt = (jax.random.uniform(k2, (2, 4, 16, 16)) > 0.5).astype(jnp.float32)

    loss = jax.block_until_ready(bce_dice_loss(y_pr, y_gt))
    ref = jax.block_until_ready(_reference(y_pr, y_gt))
    assert jnp.allclose(loss, ref, rtol=1e-5, atol=1e-5), (loss, ref)
    print("KERNEL_OK")
</pallas_src>

<mosaic_0001>
module attributes {stable_mosaic.version = 11 : i64} {
  func.func @kernel(%arg0: i32, %arg1: i32, %arg2: memref<16x128xf32, #tpu.memory_space<vmem>>, %arg3: memref<16x128xf32, #tpu.memory_space<vmem>>, %arg4: memref<32x128xf32, #tpu.memory_space<vmem>>) attributes {dimension_semantics = [#tpu.dimension_semantics<parallel>, #tpu.dimension_semantics<arbitrary>], iteration_bounds = array<i64: 2, 1>, scalar_prefetch = 0 : i64, scratch_operands = 0 : i64, tpu.core_type = #tpu.core_type<tc>, window_params = [{transform_indices = @transform_0, window_bounds = array<i64: 16, 128>}, {transform_indices = @transform_1, window_bounds = array<i64: 16, 128>}, {transform_indices = @transform_2, window_bounds = array<i64: 32, 128>}]} {
    %c0_i32 = arith.constant 0 : i32
    %0 = arith.cmpi eq, %arg1, %c0_i32 : i32
    %1 = arith.extui %0 : i1 to i32
    %c0_i32_0 = arith.constant 0 : i32
    %2 = arith.cmpi ne, %1, %c0_i32_0 : i32
    scf.if %2 {
      %cst_29 = arith.constant 0.000000e+00 : f32
      %61 = vector.broadcast %cst_29 : f32 to vector<32x128xf32>
      %c0_30 = arith.constant 0 : index
      %c0_31 = arith.constant 0 : index
      %62 = vector.load %arg4[%c0_30, %c0_31] : memref<32x128xf32, #tpu.memory_space<vmem>>, vector<32x128xf32>
      tpu.vector_store %arg4[%c0_30, %c0_31], %61 {strides = array<i32>} : memref<32x128xf32, #tpu.memory_space<vmem>>, vector<32x128xf32>,
    } else {
    }
    %c0 = arith.constant 0 : index
    %c0_1 = arith.constant 0 : index
    %3 = vector.load %arg2[%c0, %c0_1] : memref<16x128xf32, #tpu.memory_space<vmem>>, vector<16x128xf32>
    %c0_2 = arith.constant 0 : index
    %c0_3 = arith.constant 0 : index
    %4 = vector.load %arg3[%c0_2, %c0_3] : memref<16x128xf32, #tpu.memory_space<vmem>>, vector<16x128xf32>
    %c1_i32 = arith.constant 1 : i32
    %5 = arith.muli %arg0, %c1_i32 : i32
    %6 = arith.addi %5, %arg1 : i32
    %c2048_i32 = arith.constant 2048 : i32
    %7 = arith.muli %6, %c2048_i32 : i32
    %8 = tpu.iota {dimensions = array<i32: 0>} : vector<16x128xi32>
    %9 = tpu.iota {dimensions = array<i32: 1>} : vector<16x128xi32>
    %c128_i32 = arith.constant 128 : i32
    %10 = vector.broadcast %c128_i32 : i32 to vector<16x128xi32>
    %11 = arith.muli %8, %10 : vector<16x128xi32>
    %12 = vector.broadcast %7 : i32 to vector<16x128xi32>
    %13 = arith.addi %12, %11 : vector<16x128xi32>
    %14 = arith.addi %13, %9 : vector<16x128xi32>
    %c2048_i32_4 = arith.constant 2048 : i32
    %15 = vector.broadcast %c2048_i32_4 : i32 to vector<16x128xi32>
    %16 = arith.cmpi slt, %14, %15 : vector<16x128xi32>
    %17 = math.absf %3 : vector<16x128xf32>
    %cst = arith.constant 0.000000e+00 : f32
    %18 = vector.broadcast %cst : f32 to vector<16x128xf32>
    %19 = arith.subf %18, %17 : vector<16x128xf32>
    %20 = math.exp %19 : vector<16x128xf32>
    %cst_5 = arith.constant 0.000000e+00 : f32
    %21 = vector.broadcast %cst_5 : f32 to vector<16x128xf32>
    %22 = arith.cmpf oge, %3, %21 : vector<16x128xf32>
    %cst_6 = arith.constant 1.000000e+00 : f32
    %23 = vector.broadcast %cst_6 : f32 to vector<16x128xf32>
    %24 = arith.select %22, %23, %20 : vector<16x128xi1>, vector<16x128xf32>
    %cst_7 = arith.constant 1.000000e+00 : f32
    %25 = vector.broadcast %cst_7 : f32 to vector<16x128xf32>
    %26 = arith.addf %25, %20 : vector<16x128xf32>
    %27 = arith.divf %24, %26 : vector<16x128xf32>
    %cst_8 = arith.constant 0.000000e+00 : f32
    %28 = vector.broadcast %cst_8 : f32 to vector<16x128xf32>
    %29 = arith.maximumf %3, %28 : vector<16x128xf32>
    %30 = arith.mulf %3, %4 : vector<16x128xf32>
    %31 = arith.subf %29, %30 : vector<16x128xf32>
    %32 = math.log1p %20 : vector<16x128xf32>
    %33 = arith.addf %31, %32 : vector<16x128xf32>
    %cst_9 = arith.constant 0.000000e+00 : f32
    %34 = vector.broadcast %cst_9 : f32 to vector<16x128xf32>
    %35 = arith.select %16, %27, %34 : vector<16x128xi1>, vector<16x128xf32>
    %cst_10 = arith.constant 0.000000e+00 : f32
    %36 = vector.broadcast %cst_10 : f32 to vector<16x128xf32>
    %37 = arith.select %16, %4, %36 : vector<16x128xi1>, vector<16x128xf32>
    %cst_11 = arith.constant 0.000000e+00 : f32
    %38 = vector.broadcast %cst_11 : f32 to vector<16x128xf32>
    %39 = arith.select %16, %33, %38 : vector<16x128xi1>, vector<16x128xf32>
    %c0_12 = arith.constant 0 : index
    %c0_13 = arith.constant 0 : index
    %40 = vector.load %arg4[%c0_12, %c0_13] : memref<32x128xf32, #tpu.memory_space<vmem>>, vector<8x128xf32>
    %41 = arith.mulf %35, %37 : vector<16x128xf32>
    %42 = vector.shape_cast %41 : vector<16x128xf32> to vector<2x8x128xf32>
    %cst_14 = arith.constant dense<0.000000e+00> : vector<8x128xf32>
    %43 = vector.multi_reduction <add>, %42, %cst_14 [0] : vector<2x8x128xf32> to vector<8x128xf32>
    %44 = arith.addf %40, %43 : vector<8x128xf32>
    %c0_15 = arith.constant 0 : index
    %c0_16 = arith.constant 0 : index
    %45 = vector.load %arg4[%c0_15, %c0_16] : memref<32x128xf32, #tpu.memory_space<vmem>>, vector<8x128xf32>
    tpu.vector_store %arg4[%c0_15, %c0_16], %44 {strides = array<i32>} : memref<32x128xf32, #tpu.memory_space<vmem>>, vector<8x128xf32>,
    %c8 = arith.constant 8 : index
    %c0_17 = arith.constant 0 : index
    %46 = vector.load %arg4[%c8, %c0_17] : memref<32x128xf32, #tpu.memory_space<vmem>>, vector<8x128xf32>
    %47 = vector.shape_cast %35 : vector<16x128xf32> to vector<2x8x128xf32>
    %cst_18 = arith.constant dense<0.000000e+00> : vector<8x128xf32>
    %48 = vector.multi_reduction <add>, %47, %cst_18 [0] : vector<2x8x128xf32> to vector<8x128xf32>
    %49 = arith.addf %46, %48 : vector<8x128xf32>
    %c8_19 = arith.constant 8 : index
    %c0_20 = arith.constant 0 : index
    %50 = vector.load %arg4[%c8_19, %c0_20] : memref<32x128xf32, #tpu.memory_space<vmem>>, vector<8x128xf32>
    tpu.vector_store %arg4[%c8_19, %c0_20], %49 {strides = array<i32>} : memref<32x128xf32, #tpu.memory_space<vmem>>, vector<8x128xf32>,
    %c16 = arith.constant 16 : index
    %c0_21 = arith.constant 0 : index
    %51 = vector.load %arg4[%c16, %c0_21] : memref<32x128xf32, #tpu.memory_space<vmem>>, vector<8x128xf32>
    %52 = vector.shape_cast %37 : vector<16x128xf32> to vector<2x8x128xf32>
    %cst_22 = arith.constant dense<0.000000e+00> : vector<8x128xf32>
    %53 = vector.multi_reduction <add>, %52, %cst_22 [0] : vector<2x8x128xf32> to vector<8x128xf32>
    %54 = arith.addf %51, %53 : vector<8x128xf32>
    %c16_23 = arith.constant 16 : index
    %c0_24 = arith.constant 0 : index
    %55 = vector.load %arg4[%c16_23, %c0_24] : memref<32x128xf32, #tpu.memory_space<vmem>>, vector<8x128xf32>
    tpu.vector_store %arg4[%c16_23, %c0_24], %54 {strides = array<i32>} : memref<32x128xf32, #tpu.memory_space<vmem>>, vector<8x128xf32>,
    %c24 = arith.constant 24 : index
    %c0_25 = arith.constant 0 : index
    %56 = vector.load %arg4[%c24, %c0_25] : memref<32x128xf32, #tpu.memory_space<vmem>>, vector<8x128xf32>
    %57 = vector.shape_cast %39 : vector<16x128xf32> to vector<2x8x128xf32>
    %cst_26 = arith.constant dense<0.000000e+00> : vector<8x128xf32>
    %58 = vector.multi_reduction <add>, %57, %cst_26 [0] : vector<2x8x128xf32> to vector<8x128xf32>
    %59 = arith.addf %56, %58 : vector<8x128xf32>
    %c24_27 = arith.constant 24 : index
    %c0_28 = arith.constant 0 : index
    %60 = vector.load %arg4[%c24_27, %c0_28] : memref<32x128xf32, #tpu.memory_space<vmem>>, vector<8x128xf32>
    tpu.vector_store %arg4[%c24_27, %c0_28], %59 {strides = array<i32>} : memref<32x128xf32, #tpu.memory_space<vmem>>, vector<8x128xf32>,
    return
  }
  func.func @transform_0(%arg0: i32, %arg1: i32) -> (i32, i32) {
    %c1_i32 = arith.constant 1 : i32
    %0 = arith.muli %arg0, %c1_i32 : i32
    %1 = arith.addi %0, %arg1 : i32
    %c0_i32 = arith.constant 0 : i32
    %2 = arith.minsi %1, %c0_i32 : i32
    %c0_i32_0 = arith.constant 0 : i32
    %c0_i32_1 = arith.constant 0 : i32
    return %2, %c0_i32_0 : i32, i32
  }
  func.func @transform_1(%arg0: i32, %arg1: i32) -> (i32, i32) {
    %c1_i32 = arith.constant 1 : i32
    %0 = arith.muli %arg0, %c1_i32 : i32
    %1 = arith.addi %0, %arg1 : i32
    %c0_i32 = arith.constant 0 : i32
    %2 = arith.minsi %1, %c0_i32 : i32
    %c0_i32_0 = arith.constant 0 : i32
    %c0_i32_1 = arith.constant 0 : i32
    return %2, %c0_i32_0 : i32, i32
  }
  func.func @transform_2(%arg0: i32, %arg1: i32) -> (i32, i32) {
    %c0_i32 = arith.constant 0 : i32
    %c0_i32_0 = arith.constant 0 : i32
    return %arg0, %c0_i32 : i32, i32
  }
}

</mosaic_0001>

<bundles_post_ra>
// kernel: tpu_custom_call.1
= control target key start
LH: loop header
LB: loop body
LE: loop exit
PB: predicated region body
PF: predicated region fallthrough
CT: control target
= control target key end

     0   :  { %7 = vsyncpa [#allocation3], 0  ;;  %s1013_s0 = inlined_call_operand.hbm [shape: f32[16,128], index: 0, kind: input, shape index: {}]   ;;  %s1014_s1 = inlined_call_operand.hbm [shape: f32[16,128], index: 1, kind: input, shape index: {}]   ;;  %s1015_s2 = inlined_call_operand.hbm [shape: f32[64,128], index: 2, kind: output, shape index: {}]  }
   0x1   :  { %9 = vsyncpa [#allocation3 + $0x1], 0 }
   0x2   :  { %10 = vsyncpa [#allocation6], 0 }
   0x3   :  { %12 = vsyncpa [#allocation6 + $0x1], 0 }
   0x4   :  { %13 = vsyncpa [#allocation4], 0 }
   0x5   :  { %15 = vsyncpa [#allocation4 + $0x1], 0  ;;  %s777_s9 = smov 0   ;;  %s779_s10 = smov 0  }
   0x6   :  { %s781_s11 = smov 0   ;;  %s783_s12 = smov 0  }
   0x7   :  { %s785_s13 = smov 0   ;;  %s787_s14 = smov 0  }
   0x8   :  { %s789_s15 = smov 0   ;;  %s791_s16 = smov 0  }
   0x9 LB: > { %s455_s17 = sadd.s32 4294967295, %s753_s16   ;;  %s456_s18 = sadd.s32 4294967294, %s753_s16   ;;  %s753_s16 = sphi %s791_s16, %s21_s16   ;;  %s749_s15 = sphi %s789_s15, %s1034_s15   ;;  %s745_s14 = sphi %s787_s14, %s1033_s14   ;;  %s741_s13 = sphi %s785_s13, %s1003_s13   ;;  %s737_s12 = sphi %s783_s12, %s1032_s12   ;;  %s733_s11 = sphi %s781_s11, %s1031_s11   ;;  %s729_s10 = sphi %s779_s10, %s1030_s10   ;;  %s725_s9 = sphi %s777_s9, %s1029_s9  }
   0xa   : > { %s33_s19 = sadd.s32 1, %s749_s15  ;;  %p722_p1 = scmp.ne.s32.totalorder %s741_s13, 0 }
   0xb   : > { %p35_p0 = scmp.ge.s32.totalorder %s33_s19, 2  ;;  %p54_p2 = scmp.eq.s32.totalorder %s753_s16, 0 }
   0xc   : > { %p59_p3 = scmp.ne.s32.totalorder %s741_s13, %s737_s12  ;;  %p60_p5 = scmp.eq.s32.totalorder %s455_s17, 0 }
   0xd   : > { %s1036_s19 = smov (%p35_p0, %s33_s19), 0  ;;  %p823_p4 = por %p722_p1, %p54_p2 }
   0xe   : > { %p827_p6 = por %p60_p5, %p59_p3  ;;  %s101_s22 = ssub.s32 %s749_s15, %s1036_s19 }
   0xf   : > { %p102_p7 = scmp.eq.s32.totalorder %s101_s22, 0  ;;  %s104_s23 = sadd.s32 1, %s733_s11 }
  0x10   : > { %s1019_s21 = scalar_select %p827_p6, 1, 0 }
  0x11   : > { %s835_s24 = scalar_select %p102_p7, %s733_s11, %s104_s23  }
  0x12   : > { %p114_p8 = scmp.ne.s32.totalorder %s733_s11, %s729_s10  ;;  %p115_p9 = scmp.eq.s32.totalorder %s455_s17, 1 }
  0x13   : > { %p120_p10 = scmp.ne.s32.totalorder %s729_s10, %s725_s9  ;;  %p121_p11 = scmp.eq.s32.totalorder %s456_s18, 1 }
  0x14   : > { %p841_p12 = por %p115_p9, %p114_p8  ;;  %p495_p1 = scmp.lt.s32.totalorder %s753_s16, 2 }
  0x15   : > { %p846_p0 = por %p121_p11, %p120_p10  ;;  %s755_s27 = smov [#allocation2]  }
  0x16   : > { %s1020_s25 = scalar_select %p841_p12, 1, 0 }
  0x17   : > { %s1021_s26 = scalar_select %p846_p0, 1, 0 }
  0x18   : > { %s155_s28 = sshll.u32 %s755_s27, 4  ;;  %p853_p2 = pnand %p495_p1, %p823_p4  ;;  %s156_s28 = int_to_ptr.vmem [resolvable:$true] %s155_s28 }
  0x19   : > { %s586_s4 = scalar_lea.hbm %s1013_s0, 256 }
  0x1a   : > { %p587_p3 = scmp.ne.s32.totalorder %s1013_s0, %s586_s4  ;;  %p588_p5 = pneg %p853_p2 }
  0x1b   : > { %p593_p8 = scmp.lt.u32.totalorder %s586_s4, %s586_s4  ;;  %p595_p9 = scmp.lt.u32.totalorder %s586_s4, %s1013_s0 }
  0x1c   : > { %p589_p7 = pnand %p588_p5, %p587_p3 }
  0x1d   : > { %p596_p10 = por %p595_p9, %p593_p8 }
  0x1e   : > { %p590_p4 = pneg %p589_p7 }
  0x20   : > { %p597_p11 = pnand %p596_p10, %p590_p4 }
  0x22   : > { %600 = shalt.err (!%p597_p11)
}
  0x23   : > { %s601_s12 = scalar_lea.vmem %s156_s28, 256  ;;  %s608_s17 = scalar_lea.vmem %s156_s28, 512 }
  0x24   : > { %p602_p1 = scmp.ne.s32.totalorder %s156_s28, %s601_s12  ;;  %p609_p12 = scmp.lt.s32.totalorder %s156_s28, %s156_s28 }
  0x25   : > { %p610_p6 = scmp.lt.s32.totalorder %s608_s17, %s601_s12 }
  0x26   : > { %p604_p13 = pnand %p602_p1, %p588_p5 }
  0x27   : > { %p611_p3 = por %p610_p6, %p609_p12 }
  0x28   : > { %p605_p0 = pneg %p604_p13 }
  0x2a   : > { %p612_p7 = pnand %p611_p3, %p605_p0 }
  0x2c   : > { %615 = shalt.err (!%p612_p7)
}
  0x2d   : > { %s756_s18 = smov 128   ;;  %s757_s20 = smov 8  }
  0x2e   : > { %487 = dma.hbm_to_vmem [thread:$0]  (!%p853_p2), %s1013_s0, 256, %s156_s28, [#allocation3], %s756_s18, %s756_s18, %s757_s20  }
  0x2f   : > { %p465_p13 = scmp.ge.s32.totalorder %s753_s16, 1  ;;  %p187_p4 = scmp.lt.s32.totalorder %s753_s16, 3 }
  0x30   : > { %s758_s30 = smov [#allocation5]   ;;  %s616_s6 = scalar_lea.hbm %s1014_s1, 256 }
  0x31   : > { %p884_p8 = pnand %p465_p13, %p187_p4  ;;  %s179_s3 = sshll.u32 %s758_s30, 4  ;;  %s180_s3 = int_to_ptr.vmem [resolvable:$true] %s179_s3 }
  0x32   : > { %p617_p6 = scmp.ne.s32.totalorder %s1014_s1, %s616_s6  ;;  %p623_p9 = scmp.lt.u32.totalorder %s616_s6, %s616_s6 }
  0x33   : > { %s1023_s27 = scalar_select %p884_p8, 1, 0 }
  0x34   : > { %p619_p12 = pnand %p617_p6, %p588_p5  ;;  %p625_p10 = scmp.lt.u32.totalorder %s616_s6, %s1014_s1 }
  0x36   : > { %p620_p0 = pneg %p619_p12  ;;  %p626_p11 = por %p625_p10, %p623_p9 }
  0x38   : > { %p627_p1 = pnand %p626_p11, %p620_p0 }
  0x3a   : > { %630 = shalt.err (!%p627_p1)
}
  0x3b   : > { %s631_s17 = scalar_lea.vmem %s180_s3, 256  ;;  %s638_s22 = scalar_lea.vmem %s180_s3, 512 }
  0x3c   : > { %p632_p3 = scmp.ne.s32.totalorder %s180_s3, %s631_s17  ;;  %p639_p4 = scmp.lt.s32.totalorder %s180_s3, %s180_s3 }
  0x3d   : > { %p640_p8 = scmp.lt.s32.totalorder %s638_s22, %s631_s17 }
  0x3e   : > { %p634_p7 = pnand %p632_p3, %p588_p5 }
  0x3f   : > { %p641_p6 = por %p640_p8, %p639_p4 }
  0x40   : > { %p635_p13 = pneg %p634_p7 }
  0x42   : > { %p642_p12 = pnand %p641_p6, %p635_p13 }
  0x44   : > { %645 = shalt.err (!%p642_p12)
}
  0x45   : > { %490 = dma.hbm_to_vmem [thread:$0]  (!%p853_p2), %s1014_s1, 256, %s180_s3, [#allocation6], %s756_s18, %s756_s18, %s757_s20  }
  0x46   : > { %p1024_p0 = scmp.ne.s32.totalorder %s1023_s27, 0 }
  0x47   : > { %s193_s4 = sand.u32 (!%p1024_p0), 1, %s741_s13   ;;  %p1025_p5 = scmp.ne.s32.totalorder (!%p1024_p0), %s1019_s21, 0 }
  0x48   : > { %191 = sbr.rel (%p1024_p0) target bundleno = 139 (0x8b), region = 28  ;;  %s466_s5 = sshll.u32 (!%p1024_p0), %s193_s4, 4 }
  0x49   : > { %s194_s6 = scalar_lea.sflag (!%p1024_p0), [#allocation3], %s193_s4  ;;  %s197_s7 = scalar_lea.vmem (!%p1024_p0), [#allocation2], %s466_s5 }
  0x4f   : > { %711 = dma.done.wait (%p1025_p5), %s194_s6, 256  }
  0x50   : > { %713 = vsyncadd (%p1025_p5), %s194_s6, 4294967040  ;;  %s203_s29 = scalar_lea.sflag [#allocation6], %s193_s4  ;;  %s206_s8 = scalar_lea.vmem [#allocation5], %s466_s5 }
  0x51   : > { %715 = dma.done.wait (%p1025_p5), %s203_s29, 256  }
  0x52   : > { %717 = vsyncadd (%p1025_p5), %s203_s29, 4294967040  ;;  %s469_s18 = sshll.u32 %s745_s14, 11  ;;  %v255_v0 = vlaneseq  ;;  %v249_v8 = vld [vmem:[%s197_s7] sm:$0xff]  ;;  %v250_v9 = vld [vmem:[%s197_s7 + $0x8] sm:$0xff]  ;;  %s229_s20 = sand.u32 1, %s729_s10  }
  0x53   : > { %v262_v2 = vstv %s469_s18  ;;  %v269_v12 = vand.u32 2147483647, %v249_v8  ;;  %v270_v13 = vand.u32 2147483647, %v250_v9  ;;  %s468_s21 = sshll.u32 %s229_s20, 5  ;;  %v251_v17 = vld [vmem:[%s206_s8] sm:$0xff] }
  0x54   : > { %v256_v1 = vshrl.u32 %v255_v0, 7  ;;  %v259_v4 = vand.u32 127, %v255_v0  ;;  %v252_v18 = vld [vmem:[%s206_s8 + $0x8] sm:$0xff]  ;;  %s936_s27 = scalar_lea.vmem [#allocation7], %s468_s21  ;;  %vm277_vm2 = vcmp.ge.f32.partialorder %v249_v8, 0.0  ;;  %vm278_vm3 = vcmp.ge.f32.partialorder %v250_v9, 0.0 }
  0x55   : > { %v271_v15 = vsub.f32 0.0, %v269_v12  ;;  %v272_v16 = vsub.f32 0.0, %v270_v13  ;;  %v289_v30 = vmul.f32 %v251_v17, %v249_v8  ;;  %v287_v33 = vmax.f32 %v249_v8, 0.0  ;;  %s477_s3 = sshll.u32 %s745_s14, 9  ;;  %s351_s28 = sshll.u32 %s936_s27, 4  ;;  %s956_s28 = int_to_ptr.vmem [resolvable:$true] %s351_s28 }
  0x56   : > { %v257_v3 = vadd.s32 8, %v256_v1  ;;  %v260_v5 = vmul.u32 128, %v256_v1  ;;  %v290_v37 = vmul.f32 %v252_v18, %v250_v9  ;;  %v288_v38 = vmax.f32 %v250_v9, 0.0  ;;  %s954_s22 = scalar_lea.hbm %s1015_s2, %s477_s3  ;;  %s961_s14 = scalar_lea.sflag [#allocation4], %s229_s20 }
  0x57   : > { %v273_v19 = vmul.f32 1.442695, %v271_v15  ;;  %v275_v20 = vmul.f32 1.442695, %v272_v16  ;;  %v291_v46 = vsub.f32 %v287_v33, %v289_v30  ;;  %s646_s23 = scalar_lea.vmem %s956_s28, 512  ;;  %p1026_p8 = scmp.ne.s32.totalorder %s1020_s25, 0 }
  0x58   : > { %v261_v6 = vmul.u32 128, %v257_v3  ;;  %v263_v7 = vadd.s32 %v262_v2, %v260_v5  ;;  %v292_v50 = vsub.f32 %v288_v38, %v290_v37  ;;  %p647_p2 = scmp.ne.s32.totalorder %s956_s28, %s646_s23  ;;  %s759_s30 = smov [#allocation7]  }
  0x59   : > { %574 = vpow2.f32 %v273_v19  ;;  %s650_s4 = sshll.u32 %s759_s30, 4  ;;  %s651_s4 = int_to_ptr.vmem [resolvable:$false] %s650_s4 }
  0x5a   : > { %v264_v10 = vadd.s32 %v262_v2, %v261_v6  ;;  %v924_v11 = vadd.s32 %v263_v7, %v259_v4  ;;  %576 = vpow2.f32 %v275_v20  ;;  %p648_p9 = pnand %p647_p2, %p1026_p8  ;;  %s652_s5 = scalar_lea.vmem %s651_s4, 1024 }
  0x5b   : > { %p653_p11 = scmp.lt.s32.totalorder %s956_s28, %s651_s4  ;;  %p654_p1 = scmp.lt.s32.totalorder %s652_s5, %s646_s23 }
  0x5c   : > { %v926_v14 = vadd.s32 %v264_v10, %v259_v4  ;;  %vm267_vm0 = vcmp.lt.s32.totalorder %v924_v11, 2048  ;;  %p649_p10 = pneg %p648_p9 }
  0x5d   : > { %v315_v21 = vsel %vm267_vm0, %v251_v17, 0.0  ;;  %p655_p3 = por %p654_p1, %p653_p11 }
  0x5e   : > { %vm268_vm1 = vcmp.lt.s32.totalorder %v926_v14, 2048 }
  0x5f   : > { %v316_v22 = vsel %vm268_vm1, %v252_v18, 0.0  ;;  %p656_p7 = pnand %p655_p3, %p649_p10 }
  0x60   : > { %v330_v23 = vadd.f32 %v316_v22, %v315_v21 }
  0x62   : > { %332 = vst [vmem:[%s936_s27 + $0x10] sm:$0xff] %v330_v23 }
  0x63   : > { %v575_v24 = vpop.eup %574 }
  0x64   : > { %v577_v25 = vpop.eup %576  ;;  %v281_v26 = vadd.f32 1.0, %v575_v24  ;;  %v296_v28 = vmul.f32 -0.5, %v575_v24  ;;  %v279_v32 = vsel %vm277_vm2, 1.0, %v575_v24  ;;  %v299_v34 = vand.u32 2147483647, %v575_v24 }
  0x65   : > { %v282_v27 = vadd.f32 1.0, %v577_v25  ;;  %v305_v29 = vmul.f32 -0.5, %v577_v25  ;;  %v280_v36 = vsel %vm278_vm3, 1.0, %v577_v25  ;;  %v308_v39 = vand.u32 2147483647, %v577_v25 }
  0x66   : > { %578 = vrcp.f32 %v281_v26  ;;  %v297_v31 = vadd.f32 1.0, %v296_v28  ;;  %vm300_vm4 = vcmp.lt.f32.partialorder %v299_v34, 0.0004427343 }
  0x67   : > { %580 = vrcp.f32 %v282_v27  ;;  %v306_v35 = vadd.f32 1.0, %v305_v29  ;;  %vm309_vm5 = vcmp.lt.f32.partialorder %v308_v39, 0.0004427343 }
  0x68   : > { %582 = vlog2.f32 %v281_v26  ;;  %v298_v43 = vmul.f32 %v575_v24, %v297_v31 }
  0x69   : > { %584 = vlog2.f32 %v282_v27  ;;  %v307_v47 = vmul.f32 %v577_v25, %v306_v35 }
  0x70   : > { %v579_v40 = vpop.eup %578 }
  0x71   : > { %v581_v41 = vpop.eup %580  ;;  %v284_v42 = vmul.f32 %v579_v40, %v279_v32 }
  0x72   : > { %v583_v44 = vpop.eup %582  ;;  %v286_v45 = vmul.f32 %v581_v41, %v280_v36 }
  0x73   : > { %v585_v48 = vpop.eup %584  ;;  %v313_v49 = vsel %vm267_vm0, %v284_v42, 0.0  ;;  %v295_v51 = vmul.f32 0.6931472, %v583_v44 }
  0x74   : > { %v314_v52 = vsel %vm268_vm1, %v286_v45, 0.0  ;;  %v320_v53 = vmul.f32 %v315_v21, %v313_v49  ;;  %v304_v54 = vmul.f32 0.6931472, %v585_v48 }
  0x75   : > { %v321_v55 = vmul.f32 %v316_v22, %v314_v52  ;;  %v326_v56 = vadd.f32 %v314_v52, %v313_v49  ;;  %v301_v57 = vsel %vm300_vm4, %v298_v43, %v295_v51 }
  0x76   : > { %v310_v58 = vsel %vm309_vm5, %v307_v47, %v304_v54  ;;  %v311_v59 = vadd.f32 %v301_v57, %v291_v46 }
  0x77   : > { %v322_v60 = vadd.f32 %v321_v55, %v320_v53  ;;  %v312_v61 = vadd.f32 %v310_v58, %v292_v50  ;;  %328 = vst [vmem:[%s936_s27 + $0x8] sm:$0xff] %v326_v56 }
  0x78   : > { %v317_v62 = vsel %vm267_vm0, %v311_v59, 0.0 }
  0x79   : > { %v318_v63 = vsel %vm268_vm1, %v312_v61, 0.0  ;;  %324 = vst [vmem:[%s936_s27] sm:$0xff] %v322_v60 }
  0x7a   : > { %v334_v0 = vadd.f32 %v318_v63, %v317_v62 }
  0x7c   : > { %336 = vst [vmem:[%s936_s27 + $0x18] sm:$0xff] %v334_v0 }
  0x7d   : > { %659 = shalt.err (!%p656_p7)
}
  0x7e   : > { %s660_s6 = scalar_lea.hbm %s954_s22, 512  ;;  %s664_s8 = scalar_lea.hbm %s1015_s2, 1024 }
  0x7f   : > { %p661_p13 = scmp.ne.s32.totalorder %s954_s22, %s660_s6  ;;  %p665_p12 = scmp.lt.u32.totalorder %s954_s22, %s1015_s2 }
  0x80   : > { %p666_p0 = scmp.lt.u32.totalorder %s664_s8, %s660_s6  ;;  %p668_p2 = scmp.lt.u32.totalorder %s660_s6, %s954_s22 }
  0x81   : > { %p662_p4 = pnand %p661_p13, %p1026_p8 }
  0x82   : > { %p667_p5 = por %p666_p0, %p665_p12 }
  0x83   : > { %p663_p6 = pneg %p662_p4 }
  0x84   : > { %p669_p9 = por %p668_p2, %p667_p5 }
  0x86   : > { %p670_p10 = pnand %p669_p9, %p663_p6 }
  0x88   : > { %673 = shalt.err (!%p670_p10)
}
  0x89   : > { %s760_s21 = smov 128   ;;  %s761_s27 = smov 8  }
  0x8a   : > { %482 = dma.vmem_to_hbm [thread:$0]  (%p1026_p8), %s956_s28, 512, %s954_s22, %s961_s14, %s760_s21, %s760_s21, %s761_s27  }
  0x8b PF: > { %s366_s3 = sand.u32 1, %s725_s9   ;;  %p1027_p11 = scmp.ne.s32.totalorder %s1021_s26, 0 }
  0x8c   : > { %p1028_p1 = scmp.ge.s32.totalorder %s753_s16, 2  ;;  %s367_s12 = scalar_lea.sflag [#allocation4], %s366_s3 }
  0x8e   : > { %p492_p3 = pnand %p1028_p1, %p1027_p11 }
  0x90   : > { %719 = dma.done.wait (!%p492_p3), %s367_s12, 512  }
  0x91   : > { %721 = vsyncadd (!%p492_p3), %s367_s12, 4294966784  ;;  %s21_s16 = sadd.s32 1, %s753_s16   ;;  %s1029_s9 = smov %s729_s10 }
  0x92   : > { %p18_p7 = scmp.ge.s32.totalorder %s21_s16, 4   ;;  %s1030_s10 = smov %s733_s11 }
  0x93   : > { %s1031_s11 = smov %s835_s24  ;;  %s1032_s12 = smov %s741_s13 }
  0x94   : > { %s1003_s13 = smov 0   ;;  %s1033_s14 = smov %s749_s15 }
  0x95   : > { %s1034_s15 = smov %s1036_s19  ;;  %20 = sbr.rel (!%p18_p7) target bundleno = 9 (0x9), region = 90 }
  0x9c   :  { %372 = vsyncpa [#allocation3], 1 }
  0x9d   :  { %374 = vsyncpa [#allocation3 + $0x1], 1 }
  0x9e   :  { %375 = vsyncpa [#allocation6], 1 }
  0x9f   :  { %377 = vsyncpa [#allocation6 + $0x1], 1 }
  0xa0   :  { %378 = vsyncpa [#allocation4], 1 }
  0xa1   :  { %380 = vsyncpa [#allocation4 + $0x1], 1 }

</bundles_post_ra>
